<compile_context>
chip_gen: v5e
topology: v5e:2x2
jax: 0.10.0
libtpu: 0.0.40
codegen_flags: <defaults>
</compile_context>

<pallas_src>
import functools

import jax
import jax.numpy as jnp
from jax.experimental import pallas as pl
from jax.experimental.pallas import tpu as pltpu

IN_F = 500
IN_F_PAD = 512          # lane-aligned input feature count
H1, H2, H3 = 128, 64, 32
OUT_F = 3
OUT_F_PAD = 128         # lane-dense output (unmasked vst), sliced to 3 in wrapper
DEFAULT_TILE_B = 512    # fits default scoped VMEM on v5e/v6e/v7x with 2x buffering


def _round_up(n, m):
    return ((n + m - 1) // m) * m


def _pad2d(a, shape):
    return jnp.pad(a, [(0, t - s) for s, t in zip(a.shape, shape)])


def _dropout(x, p, seed, salt, row0):
    """Training-mode dropout (mask + 1/(1-p) scale).

    Uses a counter-based hash of (global_row, col, layer salt, seed) instead of
    the TPU hardware PRNG so it lowers everywhere and gives independent masks
    per batch tile (row0 = program_id * TILE_B folds the tile index in)."""
    if p <= 0.0:
        return x
    shape = x.shape
    rows = jax.lax.broadcasted_iota(jnp.int32, shape, 0).astype(jnp.uint32) + row0
    cols = jax.lax.broadcasted_iota(jnp.int32, shape, 1).astype(jnp.uint32)
    h = (rows * jnp.uint32(0x9E3779B1)) ^ (cols * jnp.uint32(0x85EBCA77))
    h = h ^ jnp.uint32((seed * 2654435761 + salt * 0x7FEB352D + 1) & 0xFFFFFFFF)
    # murmur3 fmix32 finalizer
    h = h ^ (h >> 16)
    h = h * jnp.uint32(0x85EBCA6B)
    h = h ^ (h >> 13)
    h = h * jnp.uint32(0xC2B2AE35)
    h = h ^ (h >> 16)
    keep = h >= jnp.uint32(int(p * (2 ** 32)))  # P(keep) = 1 - p
    return jnp.where(keep, x * (1.0 / (1.0 - p)), jnp.zeros_like(x))


def mynet_kernel(x_ref,
                 w1_ref, b1_ref,
                 w2_ref, b2_ref,
                 w3_ref, b3_ref,
                 w4_ref, b4_ref,
                 o_ref, *, seed, tile_b):
    # Global row offset of this batch tile (used to decorrelate dropout masks).
    row0 = (pl.program_id(0) * tile_b).astype(jnp.uint32)

    x = x_ref[...]

    # Layer 1: Linear(512(=500 padded) -> 128) + ReLU + Dropout(0.2)
    h = jnp.dot(x, w1_ref[...], preferred_element_type=jnp.float32) + b1_ref[...]
    h = jnp.maximum(h, 0.0)
    h = _dropout(h, 0.2, seed, 1, row0)

    # Layer 2: Linear(128 -> 64) + ReLU + Dropout(0.2)
    h = jnp.dot(h, w2_ref[...], preferred_element_type=jnp.float32) + b2_ref[...]
    h = jnp.maximum(h, 0.0)
    h = _dropout(h, 0.2, seed, 2, row0)

    # Layer 3: Linear(64 -> 32) + ReLU + Dropout(0.4)
    h = jnp.dot(h, w3_ref[...], preferred_element_type=jnp.float32) + b3_ref[...]
    h = jnp.maximum(h, 0.0)
    h = _dropout(h, 0.4, seed, 3, row0)

    # Layer 4: Linear(32 -> 3, padded to 128 lanes) + softmax over real columns.
    logits = jnp.dot(h, w4_ref[...], preferred_element_type=jnp.float32) + b4_ref[...]
    col = jax.lax.broadcasted_iota(jnp.int32, logits.shape, 1)
    logits = jnp.where(col < OUT_F, logits, -jnp.inf)   # mask padded lanes
    z = logits - jnp.max(logits, axis=-1, keepdims=True)
    e = jnp.exp(z)
    o_ref[...] = e / jnp.sum(e, axis=-1, keepdims=True)


def mynet_forward(x, params, seed=0, tile_b=DEFAULT_TILE_B):
    """x: [B, 500] float32.  params: dict of transposed ([in,out]) weights/biases."""
    B = x.shape[0]
    tile_b = min(tile_b, _round_up(B, 8))      # don't over-pad tiny batches
    num_tiles = pl.cdiv(B, tile_b)
    B_pad = num_tiles * tile_b

    # Wrapper-side padding for lane-aligned DMA / lane-dense stores.
    x_p = _pad2d(x.astype(jnp.float32), (B_pad, IN_F_PAD))
    w1 = _pad2d(params["w1"], (IN_F_PAD, H1))            # pad input rows 500->512
    w4 = _pad2d(params["w4"], (H3, OUT_F_PAD))           # pad output cols 3->128
    b4 = _pad2d(params["b4"], (1, OUT_F_PAD))

    flops = 2 * B_pad * (IN_F_PAD * H1 + H1 * H2 + H2 * H3 + H3 * OUT_F_PAD)
    bytes_accessed = 4 * (B_pad * IN_F_PAD + B_pad * OUT_F_PAD
                          + IN_F_PAD * H1 + H1 * H2 + H2 * H3 + H3 * OUT_F_PAD)
    transcendentals = B_pad * OUT_F_PAD

    resident = lambda i: (0, 0)   # weights/biases: same block for every tile
    out = pl.pallas_call(
        functools.partial(mynet_kernel, seed=int(seed), tile_b=tile_b),
        out_shape=jax.ShapeDtypeStruct((B_pad, OUT_F_PAD), jnp.float32),
        grid=(num_tiles,),
        in_specs=[
            pl.BlockSpec((tile_b, IN_F_PAD), lambda i: (i, 0)),  # x: streamed
            pl.BlockSpec((IN_F_PAD, H1), resident),
            pl.BlockSpec((1, H1), resident),
            pl.BlockSpec((H1, H2), resident),
            pl.BlockSpec((1, H2), resident),
            pl.BlockSpec((H2, H3), resident),
            pl.BlockSpec((1, H3), resident),
            pl.BlockSpec((H3, OUT_F_PAD), resident),
            pl.BlockSpec((1, OUT_F_PAD), resident),
        ],
        out_specs=pl.BlockSpec((tile_b, OUT_F_PAD), lambda i: (i, 0)),
        compiler_params=pltpu.CompilerParams(
            dimension_semantics=("parallel",)),          # v7x: shard tiles on 2 TCs
        cost_estimate=pl.CostEstimate(flops=flops,
                                      transcendentals=transcendentals,
                                      bytes_accessed=bytes_accessed),
    )(x_p, w1, params["b1"], params["w2"], params["b2"],
      params["w3"], params["b3"], w4, b4)

    return out[:B, :OUT_F]


def init_params(key):
    """Deterministic init mimicking PyTorch Linear default (U[-1/sqrt(in), 1/sqrt(in)]).
    Weights stored pre-transposed as [in, out]; biases stored as [1, out]."""
    dims = [(IN_F, H1), (H1, H2), (H2, H3), (H3, OUT_F)]
    params = {}
    for i, (fan_in, fan_out) in enumerate(dims, start=1):
        key, kw, kb = jax.random.split(key, 3)
        bound = 1.0 / (fan_in ** 0.5)
        params[f"w{i}"] = jax.random.uniform(
            kw, (fan_in, fan_out), jnp.float32, -bound, bound)
        params[f"b{i}"] = jax.random.uniform(
            kb, (1, fan_out), jnp.float32, -bound, bound)
    return params


if __name__ == "__main__":
    key = jax.random.PRNGKey(0)
    key, kx = jax.random.split(key)

    B = 8
    x = jax.random.normal(kx, (B, IN_F), dtype=jnp.float32)
    params = init_params(key)

    out = jax.block_until_ready(mynet_forward(x, params, seed=0))

    assert out.shape == (B, OUT_F), out.shape
    # Rows of a softmax output must sum to 1 and be non-negative/finite.
    row_sums = jnp.sum(out, axis=-1)
    assert jnp.allclose(row_sums, jnp.ones_like(row_sums), atol=1e-5), row_sums
    assert bool(jnp.all(out >= 0.0)) and bool(jnp.all(jnp.isfinite(out))), out

    print("KERNEL_OK")
</pallas_src>

<mosaic_0001>
module attributes {stable_mosaic.version = 11 : i64} {
  func.func @mynet_kernel(%arg0: i32, %arg1: memref<8x512xf32, #tpu.memory_space<vmem>>, %arg2: memref<512x128xf32, #tpu.memory_space<vmem>>, %arg3: memref<1x128xf32, #tpu.memory_space<vmem>>, %arg4: memref<128x64xf32, #tpu.memory_space<vmem>>, %arg5: memref<1x64xf32, #tpu.memory_space<vmem>>, %arg6: memref<64x32xf32, #tpu.memory_space<vmem>>, %arg7: memref<1x32xf32, #tpu.memory_space<vmem>>, %arg8: memref<32x128xf32, #tpu.memory_space<vmem>>, %arg9: memref<1x128xf32, #tpu.memory_space<vmem>>, %arg10: memref<8x128xf32, #tpu.memory_space<vmem>>) attributes {dimension_semantics = [#tpu.dimension_semantics<parallel>], iteration_bounds = array<i64: 1>, scalar_prefetch = 0 : i64, scratch_operands = 0 : i64, tpu.core_type = #tpu.core_type<tc>, window_params = [{transform_indices = @transform_0, window_bounds = array<i64: 8, 512>}, {pipeline_mode = #tpu.pipeline_mode<synchronous>, transform_indices = @transform_1, window_bounds = array<i64: 512, 128>}, {pipeline_mode = #tpu.pipeline_mode<synchronous>, transform_indices = @transform_2, window_bounds = array<i64: 1, 128>}, {pipeline_mode = #tpu.pipeline_mode<synchronous>, transform_indices = @transform_3, window_bounds = array<i64: 128, 64>}, {pipeline_mode = #tpu.pipeline_mode<synchronous>, transform_indices = @transform_4, window_bounds = array<i64: 1, 64>}, {pipeline_mode = #tpu.pipeline_mode<synchronous>, transform_indices = @transform_5, window_bounds = array<i64: 64, 32>}, {pipeline_mode = #tpu.pipeline_mode<synchronous>, transform_indices = @transform_6, window_bounds = array<i64: 1, 32>}, {pipeline_mode = #tpu.pipeline_mode<synchronous>, transform_indices = @transform_7, window_bounds = array<i64: 32, 128>}, {pipeline_mode = #tpu.pipeline_mode<synchronous>, transform_indices = @transform_8, window_bounds = array<i64: 1, 128>}, {transform_indices = @transform_9, window_bounds = array<i64: 8, 128>}]} {
    %c8_i32 = arith.constant 8 : i32
    %0 = arith.muli %arg0, %c8_i32 : i32
    %c0 = arith.constant 0 : index
    %c0_0 = arith.constant 0 : index
    %1 = vector.load %arg1[%c0, %c0_0] : memref<8x512xf32, #tpu.memory_space<vmem>>, vector<8x512xf32>
    %c0_1 = arith.constant 0 : index
    %c0_2 = arith.constant 0 : index
    %2 = vector.load %arg2[%c0_1, %c0_2] : memref<512x128xf32, #tpu.memory_space<vmem>>, vector<512x128xf32>
    %cst = arith.constant dense<0.000000e+00> : vector<8x128xf32>
    %3 = tpu.matmul %1, %2, %cst {dimension_numbers = #tpu.dot_dimension_numbers<[1], [0], [0], [1], [0, 0, 1, 1], [], []>} : vector<8x512xf32>, vector<512x128xf32>, vector<8x128xf32> -> vector<8x128xf32>
    %c0_3 = arith.constant 0 : index
    %c0_4 = arith.constant 0 : index
    %4 = vector.load %arg3[%c0_3, %c0_4] : memref<1x128xf32, #tpu.memory_space<vmem>>, vector<1x128xf32>
    %5 = vector.broadcast %4 : vector<1x128xf32> to vector<8x128xf32>
    %6 = arith.addf %3, %5 : vector<8x128xf32>
    %cst_5 = arith.constant 0.000000e+00 : f32
    %7 = vector.broadcast %cst_5 : f32 to vector<8x128xf32>
    %8 = arith.maximumf %6, %7 : vector<8x128xf32>
    %9 = tpu.iota {dimensions = array<i32: 0>} : vector<8x128xi32>
    %10 = vector.broadcast %0 : i32 to vector<8x128xi32>
    %11 = arith.addi %9, %10 : vector<8x128xi32>
    %12 = tpu.iota {dimensions = array<i32: 1>} : vector<8x128xi32>
    %c-1640531535_i32 = arith.constant -1640531535 : i32
    %13 = vector.broadcast %c-1640531535_i32 : i32 to vector<8x128xi32>
    %14 = arith.muli %11, %13 : vector<8x128xi32>
    %c-2048144777_i32 = arith.constant -2048144777 : i32
    %15 = vector.broadcast %c-2048144777_i32 : i32 to vector<8x128xi32>
    %16 = arith.muli %12, %15 : vector<8x128xi32>
    %17 = arith.xori %14, %16 : vector<8x128xi32>
    %c2146121006_i32 = arith.constant 2146121006 : i32
    %18 = vector.broadcast %c2146121006_i32 : i32 to vector<8x128xi32>
    %19 = arith.xori %17, %18 : vector<8x128xi32>
    %c16_i32 = arith.constant 16 : i32
    %20 = vector.broadcast %c16_i32 : i32 to vector<8x128xi32>
    %21 = arith.shrui %19, %20 : vector<8x128xi32>
    %22 = arith.xori %19, %21 : vector<8x128xi32>
    %c-2048144789_i32 = arith.constant -2048144789 : i32
    %23 = vector.broadcast %c-2048144789_i32 : i32 to vector<8x128xi32>
    %24 = arith.muli %22, %23 : vector<8x128xi32>
    %c13_i32 = arith.constant 13 : i32
    %25 = vector.broadcast %c13_i32 : i32 to vector<8x128xi32>
    %26 = arith.shrui %24, %25 : vector<8x128xi32>
    %27 = arith.xori %24, %26 : vector<8x128xi32>
    %c-1028477387_i32 = arith.constant -1028477387 : i32
    %28 = vector.broadcast %c-1028477387_i32 : i32 to vector<8x128xi32>
    %29 = arith.muli %27, %28 : vector<8x128xi32>
    %c16_i32_6 = arith.constant 16 : i32
    %30 = vector.broadcast %c16_i32_6 : i32 to vector<8x128xi32>
    %31 = arith.shrui %29, %30 : vector<8x128xi32>
    %32 = arith.xori %29, %31 : vector<8x128xi32>
    %c858993459_i32 = arith.constant 858993459 : i32
    %33 = vector.broadcast %c858993459_i32 : i32 to vector<8x128xi32>
    %34 = arith.cmpi uge, %32, %33 : vector<8x128xi32>
    %cst_7 = arith.constant 1.250000e+00 : f32
    %35 = vector.broadcast %cst_7 : f32 to vector<8x128xf32>
    %36 = arith.mulf %8, %35 : vector<8x128xf32>
    %cst_8 = arith.constant 0.000000e+00 : f32
    %37 = vector.broadcast %cst_8 : f32 to vector<8x128xf32>
    %38 = arith.select %34, %36, %37 : vector<8x128xi1>, vector<8x128xf32>
    %c0_9 = arith.constant 0 : index
    %c0_10 = arith.constant 0 : index
    %39 = vector.load %arg4[%c0_9, %c0_10] : memref<128x64xf32, #tpu.memory_space<vmem>>, vector<128x64xf32>
    %cst_11 = arith.constant dense<0.000000e+00> : vector<8x64xf32>
    %40 = tpu.matmul %38, %39, %cst_11 {dimension_numbers = #tpu.dot_dimension_numbers<[1], [0], [0], [1], [0, 0, 1, 1], [], []>} : vector<8x128xf32>, vector<128x64xf32>, vector<8x64xf32> -> vector<8x64xf32>
    %c0_12 = arith.constant 0 : index
    %c0_13 = arith.constant 0 : index
    %41 = vector.load %arg5[%c0_12, %c0_13] : memref<1x64xf32, #tpu.memory_space<vmem>>, vector<1x64xf32>
    %42 = vector.broadcast %41 : vector<1x64xf32> to vector<8x64xf32>
    %43 = arith.addf %40, %42 : vector<8x64xf32>
    %cst_14 = arith.constant 0.000000e+00 : f32
    %44 = vector.broadcast %cst_14 : f32 to vector<8x64xf32>
    %45 = arith.maximumf %43, %44 : vector<8x64xf32>
    %46 = tpu.iota {dimensions = array<i32: 0>} : vector<8x64xi32>
    %47 = vector.broadcast %0 : i32 to vector<8x64xi32>
    %48 = arith.addi %46, %47 : vector<8x64xi32>
    %49 = tpu.iota {dimensions = array<i32: 1>} : vector<8x64xi32>
    %c-1640531535_i32_15 = arith.constant -1640531535 : i32
    %50 = vector.broadcast %c-1640531535_i32_15 : i32 to vector<8x64xi32>
    %51 = arith.muli %48, %50 : vector<8x64xi32>
    %c-2048144777_i32_16 = arith.constant -2048144777 : i32
    %52 = vector.broadcast %c-2048144777_i32_16 : i32 to vector<8x64xi32>
    %53 = arith.muli %49, %52 : vector<8x64xi32>
    %54 = arith.xori %51, %53 : vector<8x64xi32>
    %c-2725285_i32 = arith.constant -2725285 : i32
    %55 = vector.broadcast %c-2725285_i32 : i32 to vector<8x64xi32>
    %56 = arith.xori %54, %55 : vector<8x64xi32>
    %c16_i32_17 = arith.constant 16 : i32
    %57 = vector.broadcast %c16_i32_17 : i32 to vector<8x64xi32>
    %58 = arith.shrui %56, %57 : vector<8x64xi32>
    %59 = arith.xori %56, %58 : vector<8x64xi32>
    %c-2048144789_i32_18 = arith.constant -2048144789 : i32
    %60 = vector.broadcast %c-2048144789_i32_18 : i32 to vector<8x64xi32>
    %61 = arith.muli %59, %60 : vector<8x64xi32>
    %c13_i32_19 = arith.constant 13 : i32
    %62 = vector.broadcast %c13_i32_19 : i32 to vector<8x64xi32>
    %63 = arith.shrui %61, %62 : vector<8x64xi32>
    %64 = arith.xori %61, %63 : vector<8x64xi32>
    %c-1028477387_i32_20 = arith.constant -1028477387 : i32
    %65 = vector.broadcast %c-1028477387_i32_20 : i32 to vector<8x64xi32>
    %66 = arith.muli %64, %65 : vector<8x64xi32>
    %c16_i32_21 = arith.constant 16 : i32
    %67 = vector.broadcast %c16_i32_21 : i32 to vector<8x64xi32>
    %68 = arith.shrui %66, %67 : vector<8x64xi32>
    %69 = arith.xori %66, %68 : vector<8x64xi32>
    %c858993459_i32_22 = arith.constant 858993459 : i32
    %70 = vector.broadcast %c858993459_i32_22 : i32 to vector<8x64xi32>
    %71 = arith.cmpi uge, %69, %70 : vector<8x64xi32>
    %cst_23 = arith.constant 1.250000e+00 : f32
    %72 = vector.broadcast %cst_23 : f32 to vector<8x64xf32>
    %73 = arith.mulf %45, %72 : vector<8x64xf32>
    %cst_24 = arith.constant 0.000000e+00 : f32
    %74 = vector.broadcast %cst_24 : f32 to vector<8x64xf32>
    %75 = arith.select %71, %73, %74 : vector<8x64xi1>, vector<8x64xf32>
    %c0_25 = arith.constant 0 : index
    %c0_26 = arith.constant 0 : index
    %76 = vector.load %arg6[%c0_25, %c0_26] : memref<64x32xf32, #tpu.memory_space<vmem>>, vector<64x32xf32>
    %cst_27 = arith.constant dense<0.000000e+00> : vector<8x32xf32>
    %77 = tpu.matmul %75, %76, %cst_27 {dimension_numbers = #tpu.dot_dimension_numbers<[1], [0], [0], [1], [0, 0, 1, 1], [], []>} : vector<8x64xf32>, vector<64x32xf32>, vector<8x32xf32> -> vector<8x32xf32>
    %c0_28 = arith.constant 0 : index
    %c0_29 = arith.constant 0 : index
    %78 = vector.load %arg7[%c0_28, %c0_29] : memref<1x32xf32, #tpu.memory_space<vmem>>, vector<1x32xf32>
    %79 = vector.broadcast %78 : vector<1x32xf32> to vector<8x32xf32>
    %80 = arith.addf %77, %79 : vector<8x32xf32>
    %cst_30 = arith.constant 0.000000e+00 : f32
    %81 = vector.broadcast %cst_30 : f32 to vector<8x32xf32>
    %82 = arith.maximumf %80, %81 : vector<8x32xf32>
    %83 = tpu.iota {dimensions = array<i32: 0>} : vector<8x32xi32>
    %84 = vector.broadcast %0 : i32 to vector<8x32xi32>
    %85 = arith.addi %83, %84 : vector<8x32xi32>
    %86 = tpu.iota {dimensions = array<i32: 1>} : vector<8x32xi32>
    %c-1640531535_i32_31 = arith.constant -1640531535 : i32
    %87 = vector.broadcast %c-1640531535_i32_31 : i32 to vector<8x32xi32>
    %88 = arith.muli %85, %87 : vector<8x32xi32>
    %c-2048144777_i32_32 = arith.constant -2048144777 : i32
    %89 = vector.broadcast %c-2048144777_i32_32 : i32 to vector<8x32xi32>
    %90 = arith.muli %86, %89 : vector<8x32xi32>
    %91 = arith.xori %88, %90 : vector<8x32xi32>
    %c2143395720_i32 = arith.constant 2143395720 : i32
    %92 = vector.broadcast %c2143395720_i32 : i32 to vector<8x32xi32>
    %93 = arith.xori %91, %92 : vector<8x32xi32>
    %c16_i32_33 = arith.constant 16 : i32
    %94 = vector.broadcast %c16_i32_33 : i32 to vector<8x32xi32>
    %95 = arith.shrui %93, %94 : vector<8x32xi32>
    %96 = arith.xori %93, %95 : vector<8x32xi32>
    %c-2048144789_i32_34 = arith.constant -2048144789 : i32
    %97 = vector.broadcast %c-2048144789_i32_34 : i32 to vector<8x32xi32>
    %98 = arith.muli %96, %97 : vector<8x32xi32>
    %c13_i32_35 = arith.constant 13 : i32
    %99 = vector.broadcast %c13_i32_35 : i32 to vector<8x32xi32>
    %100 = arith.shrui %98, %99 : vector<8x32xi32>
    %101 = arith.xori %98, %100 : vector<8x32xi32>
    %c-1028477387_i32_36 = arith.constant -1028477387 : i32
    %102 = vector.broadcast %c-1028477387_i32_36 : i32 to vector<8x32xi32>
    %103 = arith.muli %101, %102 : vector<8x32xi32>
    %c16_i32_37 = arith.constant 16 : i32
    %104 = vector.broadcast %c16_i32_37 : i32 to vector<8x32xi32>
    %105 = arith.shrui %103, %104 : vector<8x32xi32>
    %106 = arith.xori %103, %105 : vector<8x32xi32>
    %c1717986918_i32 = arith.constant 1717986918 : i32
    %107 = vector.broadcast %c1717986918_i32 : i32 to vector<8x32xi32>
    %108 = arith.cmpi uge, %106, %107 : vector<8x32xi32>
    %cst_38 = arith.constant 1.66666663 : f32
    %109 = vector.broadcast %cst_38 : f32 to vector<8x32xf32>
    %110 = arith.mulf %82, %109 : vector<8x32xf32>
    %cst_39 = arith.constant 0.000000e+00 : f32
    %111 = vector.broadcast %cst_39 : f32 to vector<8x32xf32>
    %112 = arith.select %108, %110, %111 : vector<8x32xi1>, vector<8x32xf32>
    %c0_40 = arith.constant 0 : index
    %c0_41 = arith.constant 0 : index
    %113 = vector.load %arg8[%c0_40, %c0_41] : memref<32x128xf32, #tpu.memory_space<vmem>>, vector<32x128xf32>
    %cst_42 = arith.constant dense<0.000000e+00> : vector<8x128xf32>
    %114 = tpu.matmul %112, %113, %cst_42 {dimension_numbers = #tpu.dot_dimension_numbers<[1], [0], [0], [1], [0, 0, 1, 1], [], []>} : vector<8x32xf32>, vector<32x128xf32>, vector<8x128xf32> -> vector<8x128xf32>
    %c0_43 = arith.constant 0 : index
    %c0_44 = arith.constant 0 : index
    %115 = vector.load %arg9[%c0_43, %c0_44] : memref<1x128xf32, #tpu.memory_space<vmem>>, vector<1x128xf32>
    %116 = vector.broadcast %115 : vector<1x128xf32> to vector<8x128xf32>
    %117 = arith.addf %114, %116 : vector<8x128xf32>
    %118 = tpu.iota {dimensions = array<i32: 1>} : vector<8x128xi32>
    %c3_i32 = arith.constant 3 : i32
    %119 = vector.broadcast %c3_i32 : i32 to vector<8x128xi32>
    %120 = arith.cmpi slt, %118, %119 : vector<8x128xi32>
    %cst_45 = arith.constant 0xFF800000 : f32
    %121 = vector.broadcast %cst_45 : f32 to vector<8x128xf32>
    %122 = arith.select %120, %117, %121 : vector<8x128xi1>, vector<8x128xf32>
    %cst_46 = arith.constant dense<0xFF800000> : vector<8xf32>
    %123 = vector.multi_reduction <maximumf>, %122, %cst_46 [1] : vector<8x128xf32> to vector<8xf32>
    %124 = vector.shape_cast %123 : vector<8xf32> to vector<8x1xf32>
    %125 = vector.broadcast %124 : vector<8x1xf32> to vector<8x128xf32>
    %126 = arith.subf %122, %125 : vector<8x128xf32>
    %127 = math.exp %126 : vector<8x128xf32>
    %cst_47 = arith.constant dense<0.000000e+00> : vector<8xf32>
    %128 = vector.multi_reduction <add>, %127, %cst_47 [1] : vector<8x128xf32> to vector<8xf32>
    %129 = vector.shape_cast %128 : vector<8xf32> to vector<8x1xf32>
    %130 = vector.broadcast %129 : vector<8x1xf32> to vector<8x128xf32>
    %131 = arith.divf %127, %130 : vector<8x128xf32>
    %c0_48 = arith.constant 0 : index
    %c0_49 = arith.constant 0 : index
    %132 = vector.load %arg10[%c0_48, %c0_49] : memref<8x128xf32, #tpu.memory_space<vmem>>, vector<8x128xf32>
    tpu.vector_store %arg10[%c0_48, %c0_49], %131 {strides = array<i32>} : memref<8x128xf32, #tpu.memory_space<vmem>>, vector<8x128xf32>,
    return
  }
  func.func @transform_0(%arg0: i32) -> (i32, i32) {
    %c0_i32 = arith.constant 0 : i32
    %c0_i32_0 = arith.constant 0 : i32
    return %arg0, %c0_i32 : i32, i32
  }
  func.func @transform_1(%arg0: i32) -> (i32, i32) {
    %c0_i32 = arith.constant 0 : i32
    %c0_i32_0 = arith.constant 0 : i32
    %c0_i32_1 = arith.constant 0 : i32
    return %c0_i32, %c0_i32_0 : i32, i32
  }
  func.func @transform_2(%arg0: i32) -> (i32, i32) {
    %c0_i32 = arith.constant 0 : i32
    %c0_i32_0 = arith.constant 0 : i32
    %c0_i32_1 = arith.constant 0 : i32
    return %c0_i32, %c0_i32_0 : i32, i32
  }
  func.func @transform_3(%arg0: i32) -> (i32, i32) {
    %c0_i32 = arith.constant 0 : i32
    %c0_i32_0 = arith.constant 0 : i32
    %c0_i32_1 = arith.constant 0 : i32
    return %c0_i32, %c0_i32_0 : i32, i32
  }
  func.func @transform_4(%arg0: i32) -> (i32, i32) {
    %c0_i32 = arith.constant 0 : i32
    %c0_i32_0 = arith.constant 0 : i32
    %c0_i32_1 = arith.constant 0 : i32
    return %c0_i32, %c0_i32_0 : i32, i32
  }
  func.func @transform_5(%arg0: i32) -> (i32, i32) {
    %c0_i32 = arith.constant 0 : i32
    %c0_i32_0 = arith.constant 0 : i32
    %c0_i32_1 = arith.constant 0 : i32
    return %c0_i32, %c0_i32_0 : i32, i32
  }
  func.func @transform_6(%arg0: i32) -> (i32, i32) {
    %c0_i32 = arith.constant 0 : i32
    %c0_i32_0 = arith.constant 0 : i32
    %c0_i32_1 = arith.constant 0 : i32
    return %c0_i32, %c0_i32_0 : i32, i32
  }
  func.func @transform_7(%arg0: i32) -> (i32, i32) {
    %c0_i32 = arith.constant 0 : i32
    %c0_i32_0 = arith.constant 0 : i32
    %c0_i32_1 = arith.constant 0 : i32
    return %c0_i32, %c0_i32_0 : i32, i32
  }
  func.func @transform_8(%arg0: i32) -> (i32, i32) {
    %c0_i32 = arith.constant 0 : i32
    %c0_i32_0 = arith.constant 0 : i32
    %c0_i32_1 = arith.constant 0 : i32
    return %c0_i32, %c0_i32_0 : i32, i32
  }
  func.func @transform_9(%arg0: i32) -> (i32, i32) {
    %c0_i32 = arith.constant 0 : i32
    %c0_i32_0 = arith.constant 0 : i32
    return %arg0, %c0_i32 : i32, i32
  }
}

</mosaic_0001>

<bundles_post_ra>
// kernel: tpu_custom_call.1
= control target key start
LH: loop header
LB: loop body
LE: loop exit
PB: predicated region body
PF: predicated region fallthrough
CT: control target
= control target key end

     0   :  { %14 = vsyncpa [#allocation3], 0  ;;  %s653_s0 = inlined_call_operand.vmem [shape: f32[8,512], index: 0, kind: input, shape index: {}]   ;;  %s654_s1 = inlined_call_operand.hbm [shape: f32[512,128], index: 1, kind: input, shape index: {}]   ;;  %s655_s2 = inlined_call_operand.vmem [shape: f32[1,128], index: 2, kind: input, shape index: {}]   ;;  %s656_s3 = inlined_call_operand.vmem [shape: f32[128,64], index: 3, kind: input, shape index: {}]   ;;  %s657_s4 = inlined_call_operand.vmem [shape: f32[1,64], index: 4, kind: input, shape index: {}]   ;;  %s658_s5 = inlined_call_operand.vmem [shape: f32[64,32], index: 5, kind: input, shape index: {}]   ;;  %s659_s6 = inlined_call_operand.vmem [shape: f32[1,32], index: 6, kind: input, shape index: {}]   ;;  %s660_s7 = inlined_call_operand.vmem [shape: f32[32,128], index: 7, kind: input, shape index: {}]   ;;  %s661_s8 = inlined_call_operand.vmem [shape: f32[1,128], index: 8, kind: input, shape index: {}]   ;;  %s662_s9 = inlined_call_operand.hbm [shape: f32[8,128], index: 9, kind: output, shape index: {}]  }
   0x1   :  { %15 = vsyncpa [#allocation4], 0  ;;  %s22_s11 = sshll.u32 %s654_s1, 4  ;;  %s476_s12 = smov [#allocation2]   ;;  %s23_s11 = int_to_ptr.hbm [resolvable:$true] %s22_s11 }
   0x2   :  { %s24_s13 = sshll.u32 %s476_s12, 4  ;;  %s477_s14 = smov 128   ;;  %s25_s13 = int_to_ptr.vmem [resolvable:$true] %s24_s13 }
   0x3   :  { %s478_s15 = smov 8  }
   0x4   :  { %30 = dma.hbm_to_vmem [thread:$0]  %s23_s11, 8192, %s25_s13, [#allocation3], %s477_s14, %s477_s14, %s478_s15  }
   0x5   :  { %472 = dma.done.wait [#allocation3], 8192  }
   0x6   :  { %473 = vsyncadd [#allocation3], 4294959104  ;;  %v101_v0 = vld [vmem:[#allocation2 + $0x178] sm:$0xff]  ;;  %v100_v2 = vld [vmem:[#allocation2 + $0x170] sm:$0xff]  ;;  %vm293_vm2 = vcmask 523264   ;;  %vm340_vm4 = vcmask 261120  }
   0x7   :  { %v69_v1 = vld [vmem:[#allocation2 + $0x78] sm:$0xff]  ;;  %162 = vmatpush.msra.mxu2 %v101_v0  ;;  %v68_v4 = vld [vmem:[#allocation2 + $0x70] sm:$0xff]  ;;  %v99_v6 = vld [vmem:[#allocation2 + $0x168] sm:$0xff]  ;;  %s396_s1 = sshll.u32 %s662_s9, 4  ;;  %s397_s1 = int_to_ptr.hbm [resolvable:$true] %s396_s1 }
   0x8   :  { %122 = vmatpush.msra.mxu0 %v69_v1  ;;  %v117_v3 = vld [vmem:[#allocation2 + $0x1f8] sm:$0xff]  ;;  %v116_v7 = vld [vmem:[#allocation2 + $0x1f0] sm:$0xff]  ;;  %v67_v8 = vld [vmem:[#allocation2 + $0x68] sm:$0xff] }
   0x9   :  { %v85_v5 = vld [vmem:[#allocation2 + $0xf8] sm:$0xff]  ;;  %182 = vmatpush.msra.mxu3 %v117_v3  ;;  %163 = vmatpush.msra.mxu2 %v100_v2  ;;  %v84_v9 = vld [vmem:[#allocation2 + $0xf0] sm:$0xff]  ;;  %v115_v10 = vld [vmem:[#allocation2 + $0x1e8] sm:$0xff] }
   0xa   :  { %142 = vmatpush.msra.mxu1 %v85_v5  ;;  %123 = vmatpush.msra.mxu0 %v68_v4  ;;  %v98_v11 = vld [vmem:[#allocation2 + $0x160] sm:$0xff]  ;;  %v83_v13 = vld [vmem:[#allocation2 + $0xe8] sm:$0xff]  ;;  %v97_v16 = vld [vmem:[#allocation2 + $0x158] sm:$0xff] }
   0xb   :  { %183 = vmatpush.msra.mxu3 %v116_v7  ;;  %v66_v12 = vld [vmem:[#allocation2 + $0x60] sm:$0xff]  ;;  %164 = vmatpush.msra.mxu2 %v99_v6  ;;  %v65_v17 = vld [vmem:[#allocation2 + $0x58] sm:$0xff]  ;;  %v96_v20 = vld [vmem:[#allocation2 + $0x150] sm:$0xff] }
   0xc   :  { %143 = vmatpush.msra.mxu1 %v84_v9  ;;  %124 = vmatpush.msra.mxu0 %v67_v8  ;;  %v114_v14 = vld [vmem:[#allocation2 + $0x1e0] sm:$0xff]  ;;  %v113_v18 = vld [vmem:[#allocation2 + $0x1d8] sm:$0xff]  ;;  %v64_v21 = vld [vmem:[#allocation2 + $0x50] sm:$0xff] }
   0xd   :  { %v82_v15 = vld [vmem:[#allocation2 + $0xe0] sm:$0xff]  ;;  %184 = vmatpush.msra.mxu3 %v115_v10  ;;  %165 = vmatpush.msra.mxu2 %v98_v11  ;;  %v81_v19 = vld [vmem:[#allocation2 + $0xd8] sm:$0xff]  ;;  %v112_v22 = vld [vmem:[#allocation2 + $0x1d0] sm:$0xff] }
   0xe   :  { %144 = vmatpush.msra.mxu1 %v83_v13  ;;  %125 = vmatpush.msra.mxu0 %v66_v12  ;;  %v80_v23 = vld [vmem:[#allocation2 + $0xd0] sm:$0xff]  ;;  %v95_v24 = vld [vmem:[#allocation2 + $0x148] sm:$0xff]  ;;  %v94_v28 = vld [vmem:[#allocation2 + $0x140] sm:$0xff]  ;;  %v203_v13 = vlaneseq }
   0xf   :  { %185 = vmatpush.msra.mxu3 %v114_v14  ;;  %166 = vmatpush.msra.mxu2 %v97_v16  ;;  %v63_v25 = vld [vmem:[#allocation2 + $0x48] sm:$0xff]  ;;  %v62_v29 = vld [vmem:[#allocation2 + $0x40] sm:$0xff]  ;;  %v93_v32 = vld [vmem:[#allocation2 + $0x138] sm:$0xff] }
  0x10   :  { %145 = vmatpush.msra.mxu1 %v82_v15  ;;  %126 = vmatpush.msra.mxu0 %v65_v17  ;;  %v111_v26 = vld [vmem:[#allocation2 + $0x1c8] sm:$0xff]  ;;  %v110_v30 = vld [vmem:[#allocation2 + $0x1c0] sm:$0xff]  ;;  %v61_v33 = vld [vmem:[#allocation2 + $0x38] sm:$0xff]  ;;  %v204_v14 = vshrl.u32 %v203_v13, 7  ;;  %v572_v15 = vand.u32 127, %v203_v13 }
  0x11   :  { %186 = vmatpush.msra.mxu3 %v113_v18  ;;  %167 = vmatpush.msra.mxu2 %v96_v20  ;;  %v79_v27 = vld [vmem:[#allocation2 + $0xc8] sm:$0xff]  ;;  %v78_v31 = vld [vmem:[#allocation2 + $0xc0] sm:$0xff]  ;;  %v109_v34 = vld [vmem:[#allocation2 + $0x1b8] sm:$0xff] }
  0x12   :  { %146 = vmatpush.msra.mxu1 %v81_v19  ;;  %127 = vmatpush.msra.mxu0 %v64_v21  ;;  %v77_v35 = vld [vmem:[#allocation2 + $0xb8] sm:$0xff]  ;;  %v92_v36 = vld [vmem:[#allocation2 + $0x130] sm:$0xff]  ;;  %v91_v40 = vld [vmem:[#allocation2 + $0x128] sm:$0xff]  ;;  %v209_v16 = vmul.u32 2654435761, %v204_v14  ;;  %vm364_vm5 = vcmp.lt.s32.totalorder %v572_v15, 3 }
  0x13   :  { %187 = vmatpush.msra.mxu3 %v112_v22  ;;  %168 = vmatpush.msra.mxu2 %v95_v24  ;;  %v60_v37 = vld [vmem:[#allocation2 + $0x30] sm:$0xff]  ;;  %v59_v41 = vld [vmem:[#allocation2 + $0x28] sm:$0xff]  ;;  %v90_v44 = vld [vmem:[#allocation2 + $0x120] sm:$0xff]  ;;  %v210_v17 = vmul.u32 2246822519, %v572_v15 }
  0x14   :  { %147 = vmatpush.msra.mxu1 %v80_v23  ;;  %128 = vmatpush.msra.mxu0 %v63_v25  ;;  %v108_v38 = vld [vmem:[#allocation2 + $0x1b0] sm:$0xff]  ;;  %v107_v42 = vld [vmem:[#allocation2 + $0x1a8] sm:$0xff]  ;;  %v58_v45 = vld [vmem:[#allocation2 + $0x20] sm:$0xff] }
  0x15   :  { %188 = vmatpush.msra.mxu3 %v111_v26  ;;  %169 = vmatpush.msra.mxu2 %v94_v28  ;;  %v76_v39 = vld [vmem:[#allocation2 + $0xb0] sm:$0xff]  ;;  %v75_v43 = vld [vmem:[#allocation2 + $0xa8] sm:$0xff]  ;;  %v106_v46 = vld [vmem:[#allocation2 + $0x1a0] sm:$0xff]  ;;  %v575_v18 = vxor.u32 %v210_v17, %v209_v16 }
  0x16   :  { %148 = vmatpush.msra.mxu1 %v79_v27  ;;  %129 = vmatpush.msra.mxu0 %v62_v29  ;;  %v74_v47 = vld [vmem:[#allocation2 + $0xa0] sm:$0xff]  ;;  %v89_v48 = vld [vmem:[#allocation2 + $0x118] sm:$0xff]  ;;  %v88_v52 = vld [vmem:[#allocation2 + $0x110] sm:$0xff] }
  0x17   :  { %189 = vmatpush.msra.mxu3 %v110_v30  ;;  %170 = vmatpush.msra.mxu2 %v93_v32  ;;  %v57_v49 = vld [vmem:[#allocation2 + $0x18] sm:$0xff]  ;;  %v56_v53 = vld [vmem:[#allocation2 + $0x10] sm:$0xff]  ;;  %v87_v54 = vld [vmem:[#allocation2 + $0x108] sm:$0xff]  ;;  %v212_v21 = vxor.u32 2146121006, %v575_v18 }
  0x18   :  { %149 = vmatpush.msra.mxu1 %v78_v31  ;;  %130 = vmatpush.msra.mxu0 %v61_v33  ;;  %v105_v50 = vld [vmem:[#allocation2 + $0x198] sm:$0xff]  ;;  %v104_v55 = vld [vmem:[#allocation2 + $0x190] sm:$0xff]  ;;  %v55_v57 = vld [vmem:[#allocation2 + $0x8] sm:$0xff] }
  0x19   :  { %190 = vmatpush.msra.mxu3 %v109_v34  ;;  %171 = vmatpush.msra.mxu2 %v92_v36  ;;  %v73_v51 = vld [vmem:[#allocation2 + $0x98] sm:$0xff]  ;;  %v72_v56 = vld [vmem:[#allocation2 + $0x90] sm:$0xff]  ;;  %v103_v58 = vld [vmem:[#allocation2 + $0x188] sm:$0xff]  ;;  %v213_v24 = vshrl.u32 %v212_v21, 16 }
  0x1a   :  { %150 = vmatpush.msra.mxu1 %v77_v35  ;;  %131 = vmatpush.msra.mxu0 %v60_v37  ;;  %v71_v59 = vld [vmem:[#allocation2 + $0x88] sm:$0xff]  ;;  %v86_v60 = vld [vmem:[#allocation2 + $0x100] sm:$0xff]  ;;  %v52_v62 = vld [vmem:[%s653_s0 + $0x10] sm:$0xff] }
  0x1b   :  { %191 = vmatpush.msra.mxu3 %v108_v38  ;;  %172 = vmatpush.msra.mxu2 %v91_v40  ;;  %v54_v61 = vld [vmem:[#allocation2] sm:$0xff]  ;;  %v53_v1 = vld [vmem:[%s653_s0 + $0x18] sm:$0xff]  ;;  %v51_v4 = vld [vmem:[%s653_s0 + $0x8] sm:$0xff]  ;;  %v214_v27 = vxor.u32 %v213_v24, %v212_v21 }
  0x1c   :  { %151 = vmatpush.msra.mxu1 %v76_v39  ;;  %132 = vmatpush.msra.mxu0 %v59_v41  ;;  %v102_v63 = vld [vmem:[#allocation2 + $0x180] sm:$0xff]  ;;  %v241_v3 = vld [vmem:[%s656_s3 + $0x78] sm:$0xff]  ;;  %v240_v5 = vld [vmem:[%s656_s3 + $0x70] sm:$0xff] }
  0x1d   :  { %192 = vmatpush.msra.mxu3 %v107_v42  ;;  %173 = vmatpush.msra.mxu2 %v90_v44  ;;  %v50_v0 = vld [vmem:[%s653_s0] sm:$0xff]  ;;  %v239_v6 = vld [vmem:[%s656_s3 + $0x68] sm:$0xff]  ;;  %v237_v8 = vld [vmem:[%s656_s3 + $0x58] sm:$0xff]  ;;  %v215_v31 = vmul.u32 2246822507, %v214_v27 }
  0x1e   :  { %152 = vmatpush.msra.mxu1 %v75_v43  ;;  %133 = vmatpush.msra.mxu0 %v58_v45  ;;  %v70_v2 = vld [vmem:[#allocation2 + $0x80] sm:$0xff]  ;;  %v236_v9 = vld [vmem:[%s656_s3 + $0x50] sm:$0xff]  ;;  %v235_v10 = vld [vmem:[%s656_s3 + $0x48] sm:$0xff] }
  0x1f   :  { %193 = vmatpush.msra.mxu3 %v106_v46  ;;  %174 = vmatpush.msra.mxu2 %v89_v48  ;;  %v238_v7 = vld [vmem:[%s656_s3 + $0x60] sm:$0xff]  ;;  %v233_v12 = vld [vmem:[%s656_s3 + $0x38] sm:$0xff]  ;;  %v232_v19 = vld [vmem:[%s656_s3 + $0x30] sm:$0xff]  ;;  %v216_v34 = vshrl.u32 %v215_v31, 13 }
  0x20   :  { %153 = vmatpush.msra.mxu1 %v74_v47  ;;  %134 = vmatpush.msra.mxu0 %v57_v49  ;;  %v234_v11 = vld [vmem:[%s656_s3 + $0x40] sm:$0xff]  ;;  %v231_v20 = vld [vmem:[%s656_s3 + $0x28] sm:$0xff]  ;;  %v229_v23 = vld [vmem:[%s656_s3 + $0x18] sm:$0xff] }
  0x21   :  { %194 = vmatpush.msra.mxu3 %v105_v50  ;;  %175 = vmatpush.msra.mxu2 %v88_v52  ;;  %v230_v22 = vld [vmem:[%s656_s3 + $0x20] sm:$0xff]  ;;  %v228_v25 = vld [vmem:[%s656_s3 + $0x10] sm:$0xff]  ;;  %v227_v26 = vld [vmem:[%s656_s3 + $0x8] sm:$0xff]  ;;  %v217_v35 = vxor.u32 %v216_v34, %v215_v31 }
  0x22   :  { %154 = vmatpush.msra.mxu1 %v73_v51  ;;  %135 = vmatpush.msra.mxu0 %v56_v53  ;;  %v226_v28 = vld [vmem:[%s656_s3] sm:$0xff]  ;;  %v288_v29 = vld [vmem:[%s658_s5 + $0x38] sm:$0xff]  ;;  %v287_v30 = vld [vmem:[%s658_s5 + $0x30] sm:$0xff]  ;;  %v267_v51 = vxor.u32 4292242011, %v575_v18 }
  0x23   :  { %195 = vmatpush.msra.mxu3 %v104_v55  ;;  %176 = vmatpush.msra.mxu2 %v87_v54  ;;  %v286_v32 = vld [vmem:[%s658_s5 + $0x28] sm:$0xff]  ;;  %v285_v33 = vld [vmem:[%s658_s5 + $0x20] sm:$0xff]  ;;  %v218_v36 = vmul.u32 3266489909, %v217_v35  ;;  %v284_v52 = vld [vmem:[%s658_s5 + $0x18] sm:$0xff] }
  0x24   :  { %155 = vmatpush.msra.mxu1 %v72_v56  ;;  %136 = vmatpush.msra.mxu0 %v55_v57  ;;  %v416_v37 = vld [vmem:[%s655_s2] ss:$0 sm:$0xff]  ;;  %v268_v53 = vshrl.u32 %v267_v51, 16  ;;  %v283_v54 = vld [vmem:[%s658_s5 + $0x10] sm:$0xff]  ;;  %v282_v55 = vld [vmem:[%s658_s5 + $0x8] sm:$0xff] }
  0x25   :  { %196 = vmatpush.msra.mxu3 %v103_v58  ;;  %177 = vmatpush.msra.mxu2 %v86_v60  ;;  %v219_v38 = vshrl.u32 %v218_v36, 16  ;;  %v281_v57 = vld [vmem:[%s658_s5] sm:$0xff] }
  0x26   :  { %156 = vmatpush.msra.mxu1 %v71_v59  ;;  %137 = vmatpush.msra.mxu0 %v54_v61  ;;  %v269_v56 = vxor.u32 %v268_v53, %v267_v51  ;;  %v332_v13 = vld [vmem:[%s660_s7] sm:$0xff] }
  0x27   :  { %178 = vmatmul.f32.vlgmr.msra.gmra.mxu2 %v52_v62  ;;  %197 = vmatpush.msra.mxu3 %v102_v63  ;;  %v220_v43 = vxor.u32 %v219_v38, %v218_v36  ;;  %v418_v21 = vld [vmem:[%s659_s6] ss:$0 sm:$0xff]  ;;  %s479_s6 = smov [#allocation5]  }
  0x28   :  { %138 = vmatmul.f32.vlgmr.msra.gmra.mxu0 %v50_v0  ;;  %198 = vmatmul.f32.vlgmr.msra.gmra.mxu3 %v53_v1  ;;  %v270_v58 = vmul.u32 2246822507, %v269_v56  ;;  %v417_v0 = vld [vmem:[%s657_s4] ss:$0 sm:$0xff] }
  0x29   :  { %157 = vmatpush.msra.mxu1 %v70_v2  ;;  %246 = vmatpush.msrb.mxu0 %v241_v3  ;;  %v406_v47 = vxor.u32 2147483648, %v220_v43 }
  0x2a   :  { %158 = vmatmul.f32.vlgmr.msra.gmra.mxu1 %v51_v4  ;;  %v271_v59 = vshrl.u32 %v270_v58, 13 }
  0x2b   :  { %247 = vmatpush.msrb.mxu0 %v240_v5  ;;  %305 = vmatpush.msrb.mxu1 %v288_v29  ;;  %vm223_vm0 = vcmp.ge.s32.totalorder %v406_v47, 3006477107 }
  0x2c   :  { %v272_v60 = vxor.u32 %v271_v59, %v270_v58 }
  0x2d   :  { %248 = vmatpush.msrb.mxu0 %v239_v6  ;;  %306 = vmatpush.msrb.mxu1 %v287_v30 }
  0x2e   :  { %v273_v61 = vmul.u32 3266489909, %v272_v60 }
  0x2f   :  { %249 = vmatpush.msrb.mxu0 %v238_v7  ;;  %307 = vmatpush.msrb.mxu1 %v286_v32  ;;  %v318_v7 = vxor.u32 2143395720, %v575_v18 }
  0x30   :  { %v274_v62 = vshrl.u32 %v273_v61, 16 }
  0x31   :  { %250 = vmatpush.msrb.mxu0 %v237_v8  ;;  %308 = vmatpush.msrb.mxu1 %v285_v33  ;;  %v335_v8 = vld [vmem:[%s660_s7 + $0x18] sm:$0xff] }
  0x32   :  { %v275_v63 = vxor.u32 %v274_v62, %v273_v61  ;;  %356 = vmatpush.msrb.mxu2 %v335_v8 }
  0x33   :  { %251 = vmatpush.msrb.mxu0 %v236_v9  ;;  %309 = vmatpush.msrb.mxu1 %v284_v52  ;;  %v319_v9 = vshrl.u32 %v318_v7, 16 }
  0x34   :  { %v408_v2 = vxor.u32 2147483648, %v275_v63 }
  0x35   :  { %252 = vmatpush.msrb.mxu0 %v235_v10  ;;  %310 = vmatpush.msrb.mxu1 %v283_v54  ;;  %v334_v10 = vld [vmem:[%s660_s7 + $0x10] sm:$0xff] }
  0x36   :  { %vm278_vm1 = vcmp.ge.s32.totalorder %v408_v2, 3006477107  ;;  %357 = vmatpush.msrb.mxu2 %v334_v10 }
  0x37   :  { %253 = vmatpush.msrb.mxu0 %v234_v11  ;;  %311 = vmatpush.msrb.mxu1 %v282_v55  ;;  %v333_v11 = vld [vmem:[%s660_s7 + $0x8] sm:$0xff] }
  0x38   :  { %358 = vmatpush.msrb.mxu2 %v333_v11 }
  0x39   :  { %254 = vmatpush.msrb.mxu0 %v233_v12  ;;  %312 = vmatpush.msrb.mxu1 %v281_v57  ;;  %v320_v12 = vxor.u32 %v319_v9, %v318_v7 }
  0x3a   :  { %359 = vmatpush.msrb.mxu2 %v332_v13 }
  0x3b   :  { %255 = vmatpush.msrb.mxu0 %v232_v19  ;;  %v321_v14 = vmul.u32 2246822507, %v320_v12 }
  0x3d   :  { %256 = vmatpush.msrb.mxu0 %v231_v20  ;;  %v322_v16 = vshrl.u32 %v321_v14, 13 }
  0x3f   :  { %257 = vmatpush.msrb.mxu0 %v230_v22  ;;  %v323_v17 = vxor.u32 %v322_v16, %v321_v14 }
  0x41   :  { %258 = vmatpush.msrb.mxu0 %v229_v23  ;;  %v324_v18 = vmul.u32 3266489909, %v323_v17 }
  0x43   :  { %259 = vmatpush.msrb.mxu0 %v228_v25  ;;  %v325_v19 = vshrl.u32 %v324_v18, 16 }
  0x45   :  { %260 = vmatpush.msrb.mxu0 %v227_v26  ;;  %v326_v20 = vxor.u32 %v325_v19, %v324_v18 }
  0x47   :  { %261 = vmatpush.msrb.mxu0 %v226_v28  ;;  %v410_v23 = vxor.u32 2147483648, %v326_v20  ;;  %v419_v28 = vld [vmem:[%s661_s8] ss:$0 sm:$0xff]  ;;  %s394_s8 = sshll.u32 %s479_s6, 4  ;;  %s395_s8 = int_to_ptr.vmem [resolvable:$true] %s394_s8 }
  0x49   :  { %vm329_vm3 = vcmp.ge.s32.totalorder %v410_v23, 3865470566 }
  0xa5   :  { %v139_v39 = vpop.f32.mrf.mxu0 }
  0xa6   :  { %v140_v40 = vadd.f32 %v416_v37, %v139_v39 }
  0xa7   :  { %v159_v41 = vpop.f32.mrf.mxu1 }
  0xa8   :  { %v160_v42 = vadd.f32 %v159_v41, %v140_v40 }
  0xaa   :  { %v179_v44 = vpop.f32.mrf.mxu2 }
  0xab   :  { %v180_v45 = vadd.f32 %v179_v44, %v160_v42  ;;  %v199_v46 = vpop.f32.mrf.mxu3 }
  0xad   :  { %v200_v48 = vadd.f32 %v199_v46, %v180_v45 }
  0xaf   :  { %v202_v49 = vmax.f32 %v200_v48, 0.0 }
  0xb1   :  { %v224_v50 = vmul.f32 1.25, %v202_v49 }
  0xb3   :  { %407 = vmatmul.msk.f32.vlgmr.msrb.gmra.mxu0 %vm223_vm0, %v224_v50 }
 0x130   :  { %v263_v1 = vpop.f32.mrf.mxu0 }
 0x131   :  { %v264_v3 = vadd.f32 %v417_v0, %v263_v1 }
 0x133   :  { %v266_v4 = vmax.f32 %v264_v3, 0.0 }
 0x135   :  { %v279_v5 = vmul.f32 1.25, %v266_v4 }
 0x137   :  { %v280_v6 = vsel %vm278_vm1, %v279_v5, 0.0 }
 0x138   :  { %409 = vmatmul.msk.f32.vlgmr.msrb.gmra.mxu1 %vm293_vm2, %v280_v6 }
 0x1b5   :  { %v314_v22 = vpop.f32.mrf.mxu1 }
 0x1b6   :  { %v315_v24 = vadd.f32 %v418_v21, %v314_v22 }
 0x1b8   :  { %v317_v25 = vmax.f32 %v315_v24, 0.0 }
 0x1ba   :  { %v330_v26 = vmul.f32 1.6666666, %v317_v25 }
 0x1bc   :  { %v331_v27 = vsel %vm329_vm3, %v330_v26, 0.0 }
 0x1bd   :  { %411 = vmatmul.msk.f32.vlgmr.msrb.gmra.mxu2 %vm340_vm4, %v331_v27 }
 0x240   :  { %v361_v29 = vpop.f32.mrf.mxu2 }
 0x241   :  { %v362_v30 = vadd.f32 %v419_v28, %v361_v29 }
 0x243   :  { %v365_v31 = vsel %vm364_vm5, %v362_v30, -inf }
 0x244   :  { %366 = vmax.xlane.f32.xlu0 %v365_v31 }
 0x2b7   :  { %v367_v32 = vpop.xlane.xlu0 %366 }
 0x2b8   :  { %v368_v33 = vsub.f32 %v365_v31, %v367_v32 }
 0x2ba   :  { %v369_v34 = vmul.f32 1.442695, %v368_v33 }
 0x2bc   :  { %420 = vpow2.f32 %v369_v34 }
 0x2c2   :  { %v421_v35 = vpop.eup %420 }
 0x2c3   :  { %371 = vadd.xlane.f32.xlu0 %v421_v35 }
 0x336   :  { %v372_v36 = vpop.xlane.xlu0 %371 }
 0x337   :  { %422 = vrcp.f32 %v372_v36  ;;  %v384_v40 = vand.u32 2147483648, %v372_v36  ;;  %v382_v42 = vand.u32 2147483647, %v372_v36  ;;  %vm378_vm7 = vweird.f32 %v372_v36 }
 0x339   :  { %v385_v15 = vor.u32 1.1754944e-38, %v384_v40  ;;  %vm383_vm9 = vcmp.eq.f32.partialorder %v382_v42, 8.507059e+37 }
 0x33d   :  { %v423_v37 = vpop.eup %422 }
 0x33e   :  { %v374_v38 = vmul.f32 %v423_v37, %v372_v36  ;;  %vm379_vm6 = vweird.f32 %v423_v37 }
 0x33f   :  { %vm380_vm8 = vmor %vm378_vm7, %vm379_vm6 }
 0x340   :  { %v375_v39 = vsub.f32 1.0, %v374_v38 }
 0x342   :  { %v376_v41 = vmul.f32 %v423_v37, %v375_v39 }
 0x344   :  { %v377_v43 = vadd.f32 %v423_v37, %v376_v41 }
 0x346   :  { %v381_v44 = vsel %vm380_vm8, %v423_v37, %v377_v43 }
 0x347   :  { %v386_v45 = vsel %vm383_vm9, %v385_v15, %v381_v44 }
 0x348   :  { %v387_v46 = vmul.f32 %v421_v35, %v386_v45 }
 0x34a   :  { %388 = vst [vmem:[#allocation5] sm:$0xff] %v387_v46 }
 0x34b   :  { %399 = dma.vmem_to_hbm [thread:$0]  %s395_s8, 128, %s397_s1, [#allocation4]  }
 0x34c   :  { %474 = dma.done.wait [#allocation4], 128  }
 0x34d   :  { %475 = vsyncadd [#allocation4], 4294967168 }
 0x34e   :  { %404 = vsyncpa [#allocation3], 1 }
 0x34f   :  { %405 = vsyncpa [#allocation4], 1 }

</bundles_post_ra>
